<compile_context>
chip_gen: v6e
topology: v6e:2x2x1
jax: 0.10.0
libtpu: 0.0.40
codegen_flags: <defaults>
</compile_context>

<pallas_src>
import functools

import jax
import jax.numpy as jnp
from jax.experimental import pallas as pl
from jax.experimental.pallas import tpu as pltpu

OUT_FEATURES = 5
OUT_PAD = 8            # lane-padded output width (full last dim of out array)
MAX_TILE_B = 16384     # rows per grid step; amortizes ~0.35 us/step overhead
                       # to <5% of per-tile MXU issue while keeping the
                       # double-buffered VMEM footprint ~20 MiB on every gen.


def _round_up(x, m):
    return ((x + m - 1) // m) * m


def _mlp_kernel(x_ref, w1_ref, b1_ref, w2_ref, b2_ref, w3_ref, b3_ref, o_ref):
    # x arrives f32; cast to bf16 on the VPU here (idle slot) instead of in the
    # wrapper, so x is read from HBM exactly once.  Accumulate/bias/ReLU in f32.
    x = x_ref[...].astype(jnp.bfloat16)                              # (TILE_B, D)

    h1 = jnp.dot(x, w1_ref[...], preferred_element_type=jnp.float32) + b1_ref[...]
    h1 = jnp.maximum(h1, 0.0)                                        # f32

    h2 = jnp.dot(h1.astype(jnp.bfloat16), w2_ref[...],
                 preferred_element_type=jnp.float32) + b2_ref[...]
    h2 = jnp.maximum(h2, 0.0)                                        # f32

    out = jnp.dot(h2.astype(jnp.bfloat16), w3_ref[...],
                  preferred_element_type=jnp.float32) + b3_ref[...]
    # Dropout in eval mode == identity.  bf16 store halves the write stream
    # and the lane-padded output VMEM buffers.
    o_ref[...] = out.astype(o_ref.dtype)                             # (TILE_B, OUT_PAD)


@functools.partial(jax.jit, static_argnames=("max_tile_b",))
def trajectory_nn_forward(x, params, *, max_tile_b=MAX_TILE_B):
    """x: (B, traj_len, input_size) float32. Returns (B, 5) float32.

    NOTE: Dropout(0.2) runs in eval mode (identity).
    """
    w1, b1, w2, b2, w3, b3 = params
    B = x.shape[0]
    D = w1.shape[0]
    x_flat = x.reshape(B, -1)                    # == torch x.view(x.size(0), -1)
    assert x_flat.shape[1] == D, (x_flat.shape, D)

    # ---- lane-pad the last layer to OUT_PAD (zero columns contribute 0) ----
    w3p = jnp.zeros((w3.shape[0], OUT_PAD), jnp.float32).at[:, :OUT_FEATURES].set(w3)
    b3p = jnp.zeros((1, OUT_PAD), jnp.float32).at[:, :OUT_FEATURES].set(b3)

    # ---- batch tiling: pad B only up to a multiple of 8; the last grid -----
    # ---- tile may be partial (Pallas masks OOB writes; rows independent) ---
    b_pad = _round_up(B, 8)
    if b_pad != B:
        x_flat = jnp.pad(x_flat, ((0, b_pad - B), (0, 0)))
    if b_pad <= 8:
        tile_rows = b_pad                         # can't split an 8-row batch
    else:
        # Aim for >= 2 grid steps so the batch shards across v7x's two
        # TensorCores; cap the tile so double-buffered VMEM stays ~20 MiB.
        tile_rows = min(max_tile_b, _round_up(pl.cdiv(b_pad, 2), 8))
    n_tiles = pl.cdiv(b_pad, tile_rows)

    # Weights are tiny and VMEM-resident; cast them (not x) to bf16.
    w1b = w1.astype(jnp.bfloat16)
    w2b = w2.astype(jnp.bfloat16)
    w3b = w3p.astype(jnp.bfloat16)

    flops = 2 * b_pad * (D * 16 + 16 * 16 + 16 * OUT_PAD)
    bytes_accessed = (
        b_pad * D * 4                    # x (f32) read, straight from HBM
        + b_pad * OUT_PAD * 2            # output (bf16) write
        + (w1b.size + w2b.size + w3b.size) * 2
        + (b1.size + b2.size + b3p.size) * 4
    )

    out_padded = pl.pallas_call(
        _mlp_kernel,
        out_shape=jax.ShapeDtypeStruct((b_pad, OUT_PAD), jnp.bfloat16),
        grid=(n_tiles,),
        in_specs=[
            pl.BlockSpec((tile_rows, D), lambda i: (i, 0)),      # x: tiled over batch
            pl.BlockSpec((D, 16), lambda i: (0, 0)),             # w1: resident
            pl.BlockSpec((1, 16), lambda i: (0, 0)),             # b1: resident
            pl.BlockSpec((16, 16), lambda i: (0, 0)),            # w2: resident
            pl.BlockSpec((1, 16), lambda i: (0, 0)),             # b2: resident
            pl.BlockSpec((16, OUT_PAD), lambda i: (0, 0)),       # w3 (padded): resident
            pl.BlockSpec((1, OUT_PAD), lambda i: (0, 0)),        # b3 (padded): resident
        ],
        out_specs=pl.BlockSpec((tile_rows, OUT_PAD), lambda i: (i, 0)),
        compiler_params=pltpu.CompilerParams(
            dimension_semantics=("parallel",),        # shard batch over 2 TCs on v7x
            vmem_limit_bytes=32 * 1024 * 1024,        # actual use ~20 MiB at max tile
        ),
        cost_estimate=pl.CostEstimate(
            flops=flops, transcendentals=0, bytes_accessed=bytes_accessed),
    )(x_flat, w1b, b1, w2b, b2, w3b, b3p)

    return out_padded[:B, :OUT_FEATURES].astype(jnp.float32)


def init_params(key, input_size, traj_len):
    """Deterministic init mirroring nn.Linear default (uniform +-1/sqrt(fan_in)).
    Weights stored transposed: (in_features, out_features)."""
    D = input_size * traj_len
    dims = [(D, 16), (16, 16), (16, OUT_FEATURES)]
    params = []
    for i, (fan_in, fan_out) in enumerate(dims):
        kw, kb = jax.random.split(jax.random.fold_in(key, i))
        bound = 1.0 / (fan_in ** 0.5)
        w = jax.random.uniform(kw, (fan_in, fan_out), jnp.float32, -bound, bound)
        b = jax.random.uniform(kb, (1, fan_out), jnp.float32, -bound, bound)
        params += [w, b]
    return tuple(params)


def reference_forward_bf16(x, params):
    """Pure-JAX reference mirroring the kernel's bf16-in / f32-accumulate math."""
    w1, b1, w2, b2, w3, b3 = params
    h = x.reshape(x.shape[0], -1).astype(jnp.bfloat16)
    h = jnp.maximum(
        jnp.dot(h, w1.astype(jnp.bfloat16), preferred_element_type=jnp.float32) + b1, 0.0)
    h = jnp.maximum(
        jnp.dot(h.astype(jnp.bfloat16), w2.astype(jnp.bfloat16),
                preferred_element_type=jnp.float32) + b2, 0.0)
    return jnp.dot(h.astype(jnp.bfloat16), w3.astype(jnp.bfloat16),
                   preferred_element_type=jnp.float32) + b3


def reference_forward_f32(x, params):
    """Pure-f32 reference (loose sanity check for bf16 quantization drift)."""
    w1, b1, w2, b2, w3, b3 = params
    h = x.reshape(x.shape[0], -1)
    h = jnp.maximum(h @ w1 + b1, 0.0)
    h = jnp.maximum(h @ w2 + b2, 0.0)
    return h @ w3 + b3


if __name__ == "__main__":
    # Small shapes consistent with the module: batch=2, input_size=4, traj_len=8 (D=32).
    B, input_size, traj_len = 2, 4, 8
    key = jax.random.PRNGKey(0)
    kx, kp = jax.random.split(key)

    x = jax.random.normal(kx, (B, traj_len, input_size), dtype=jnp.float32)
    params = init_params(kp, input_size, traj_len)

    out = trajectory_nn_forward(x, params)
    out = jax.block_until_ready(out)
    assert out.shape == (B, OUT_FEATURES), out.shape

    # Check against a reference mirroring the kernel's bf16/f32 math
    # (tolerance covers the bf16 rounding of the stored output).
    ref_bf16 = reference_forward_bf16(x, params)
    assert jnp.allclose(out, ref_bf16, atol=3e-2, rtol=3e-2), (out, ref_bf16)

    # Loose check against the pure-f32 math (bounds bf16 quantization drift).
    ref_f32 = reference_forward_f32(x, params)
    assert jnp.allclose(out, ref_f32, atol=1e-1, rtol=1e-1), (out, ref_f32)

    print("KERNEL_OK")
</pallas_src>

<mosaic_0001>
module attributes {stable_mosaic.version = 11 : i64} {
  func.func @_mlp_kernel(%arg0: i32, %arg1: memref<8x32xf32, #tpu.memory_space<vmem>>, %arg2: memref<32x16xbf16, #tpu.memory_space<vmem>>, %arg3: memref<1x16xf32, #tpu.memory_space<vmem>>, %arg4: memref<16x16xbf16, #tpu.memory_space<vmem>>, %arg5: memref<1x16xf32, #tpu.memory_space<vmem>>, %arg6: memref<16x8xbf16, #tpu.memory_space<vmem>>, %arg7: memref<1x8xf32, #tpu.memory_space<vmem>>, %arg8: memref<8x8xbf16, #tpu.memory_space<vmem>>) attributes {dimension_semantics = [#tpu.dimension_semantics<parallel>], iteration_bounds = array<i64: 1>, scalar_prefetch = 0 : i64, scratch_operands = 0 : i64, tpu.core_type = #tpu.core_type<tc>, window_params = [{transform_indices = @transform_0, window_bounds = array<i64: 8, 32>}, {pipeline_mode = #tpu.pipeline_mode<synchronous>, transform_indices = @transform_1, window_bounds = array<i64: 32, 16>}, {pipeline_mode = #tpu.pipeline_mode<synchronous>, transform_indices = @transform_2, window_bounds = array<i64: 1, 16>}, {pipeline_mode = #tpu.pipeline_mode<synchronous>, transform_indices = @transform_3, window_bounds = array<i64: 16, 16>}, {pipeline_mode = #tpu.pipeline_mode<synchronous>, transform_indices = @transform_4, window_bounds = array<i64: 1, 16>}, {pipeline_mode = #tpu.pipeline_mode<synchronous>, transform_indices = @transform_5, window_bounds = array<i64: 16, 8>}, {pipeline_mode = #tpu.pipeline_mode<synchronous>, transform_indices = @transform_6, window_bounds = array<i64: 1, 8>}, {transform_indices = @transform_7, window_bounds = array<i64: 8, 8>}]} {
    %c0 = arith.constant 0 : index
    %c0_0 = arith.constant 0 : index
    %0 = vector.load %arg1[%c0, %c0_0] : memref<8x32xf32, #tpu.memory_space<vmem>>, vector<8x32xf32>
    %1 = arith.truncf %0 : vector<8x32xf32> to vector<8x32xbf16>
    %c0_1 = arith.constant 0 : index
    %c0_2 = arith.constant 0 : index
    %2 = vector.load %arg2[%c0_1, %c0_2] : memref<32x16xbf16, #tpu.memory_space<vmem>>, vector<32x16xbf16>
    %cst = arith.constant dense<0.000000e+00> : vector<8x16xf32>
    %3 = tpu.matmul %1, %2, %cst {dimension_numbers = #tpu.dot_dimension_numbers<[1], [0], [0], [1], [0, 0, 1, 1], [], []>} : vector<8x32xbf16>, vector<32x16xbf16>, vector<8x16xf32> -> vector<8x16xf32>
    %c0_3 = arith.constant 0 : index
    %c0_4 = arith.constant 0 : index
    %4 = vector.load %arg3[%c0_3, %c0_4] : memref<1x16xf32, #tpu.memory_space<vmem>>, vector<1x16xf32>
    %5 = vector.broadcast %4 : vector<1x16xf32> to vector<8x16xf32>
    %6 = arith.addf %3, %5 : vector<8x16xf32>
    %cst_5 = arith.constant 0.000000e+00 : f32
    %7 = vector.broadcast %cst_5 : f32 to vector<8x16xf32>
    %8 = arith.maximumf %6, %7 : vector<8x16xf32>
    %9 = arith.truncf %8 : vector<8x16xf32> to vector<8x16xbf16>
    %c0_6 = arith.constant 0 : index
    %c0_7 = arith.constant 0 : index
    %10 = vector.load %arg4[%c0_6, %c0_7] : memref<16x16xbf16, #tpu.memory_space<vmem>>, vector<16x16xbf16>
    %cst_8 = arith.constant dense<0.000000e+00> : vector<8x16xf32>
    %11 = tpu.matmul %9, %10, %cst_8 {dimension_numbers = #tpu.dot_dimension_numbers<[1], [0], [0], [1], [0, 0, 1, 1], [], []>} : vector<8x16xbf16>, vector<16x16xbf16>, vector<8x16xf32> -> vector<8x16xf32>
    %c0_9 = arith.constant 0 : index
    %c0_10 = arith.constant 0 : index
    %12 = vector.load %arg5[%c0_9, %c0_10] : memref<1x16xf32, #tpu.memory_space<vmem>>, vector<1x16xf32>
    %13 = vector.broadcast %12 : vector<1x16xf32> to vector<8x16xf32>
    %14 = arith.addf %11, %13 : vector<8x16xf32>
    %cst_11 = arith.constant 0.000000e+00 : f32
    %15 = vector.broadcast %cst_11 : f32 to vector<8x16xf32>
    %16 = arith.maximumf %14, %15 : vector<8x16xf32>
    %17 = arith.truncf %16 : vector<8x16xf32> to vector<8x16xbf16>
    %c0_12 = arith.constant 0 : index
    %c0_13 = arith.constant 0 : index
    %18 = vector.load %arg6[%c0_12, %c0_13] : memref<16x8xbf16, #tpu.memory_space<vmem>>, vector<16x8xbf16>
    %cst_14 = arith.constant dense<0.000000e+00> : vector<8x8xf32>
    %19 = tpu.matmul %17, %18, %cst_14 {dimension_numbers = #tpu.dot_dimension_numbers<[1], [0], [0], [1], [0, 0, 1, 1], [], []>} : vector<8x16xbf16>, vector<16x8xbf16>, vector<8x8xf32> -> vector<8x8xf32>
    %c0_15 = arith.constant 0 : index
    %c0_16 = arith.constant 0 : index
    %20 = vector.load %arg7[%c0_15, %c0_16] : memref<1x8xf32, #tpu.memory_space<vmem>>, vector<1x8xf32>
    %21 = vector.broadcast %20 : vector<1x8xf32> to vector<8x8xf32>
    %22 = arith.addf %19, %21 : vector<8x8xf32>
    %23 = arith.truncf %22 : vector<8x8xf32> to vector<8x8xbf16>
    %c0_17 = arith.constant 0 : index
    %c0_18 = arith.constant 0 : index
    %24 = vector.load %arg8[%c0_17, %c0_18] : memref<8x8xbf16, #tpu.memory_space<vmem>>, vector<8x8xbf16>
    tpu.vector_store %arg8[%c0_17, %c0_18], %23 {strides = array<i32>} : memref<8x8xbf16, #tpu.memory_space<vmem>>, vector<8x8xbf16>,
    return
  }
  func.func @transform_0(%arg0: i32) -> (i32, i32) {
    %c0_i32 = arith.constant 0 : i32
    %c0_i32_0 = arith.constant 0 : i32
    return %arg0, %c0_i32 : i32, i32
  }
  func.func @transform_1(%arg0: i32) -> (i32, i32) {
    %c0_i32 = arith.constant 0 : i32
    %c0_i32_0 = arith.constant 0 : i32
    %c0_i32_1 = arith.constant 0 : i32
    return %c0_i32, %c0_i32_0 : i32, i32
  }
  func.func @transform_2(%arg0: i32) -> (i32, i32) {
    %c0_i32 = arith.constant 0 : i32
    %c0_i32_0 = arith.constant 0 : i32
    %c0_i32_1 = arith.constant 0 : i32
    return %c0_i32, %c0_i32_0 : i32, i32
  }
  func.func @transform_3(%arg0: i32) -> (i32, i32) {
    %c0_i32 = arith.constant 0 : i32
    %c0_i32_0 = arith.constant 0 : i32
    %c0_i32_1 = arith.constant 0 : i32
    return %c0_i32, %c0_i32_0 : i32, i32
  }
  func.func @transform_4(%arg0: i32) -> (i32, i32) {
    %c0_i32 = arith.constant 0 : i32
    %c0_i32_0 = arith.constant 0 : i32
    %c0_i32_1 = arith.constant 0 : i32
    return %c0_i32, %c0_i32_0 : i32, i32
  }
  func.func @transform_5(%arg0: i32) -> (i32, i32) {
    %c0_i32 = arith.constant 0 : i32
    %c0_i32_0 = arith.constant 0 : i32
    %c0_i32_1 = arith.constant 0 : i32
    return %c0_i32, %c0_i32_0 : i32, i32
  }
  func.func @transform_6(%arg0: i32) -> (i32, i32) {
    %c0_i32 = arith.constant 0 : i32
    %c0_i32_0 = arith.constant 0 : i32
    %c0_i32_1 = arith.constant 0 : i32
    return %c0_i32, %c0_i32_0 : i32, i32
  }
  func.func @transform_7(%arg0: i32) -> (i32, i32) {
    %c0_i32 = arith.constant 0 : i32
    %c0_i32_0 = arith.constant 0 : i32
    return %arg0, %c0_i32 : i32, i32
  }
}

</mosaic_0001>

<bundles_post_ra>
// kernel: trajectory_nn_forward.1
= control target key start
LH: loop header
LB: loop body
LE: loop exit
PB: predicated region body
PF: predicated region fallthrough
CT: control target
= control target key end

     0   :  { %v267_v0 = vmov 0.0   ;;  %vm268_vm0 = vmmov 0   ;;  %vm52_vm1 = vcmask 261120   ;;  %vm113_vm2 = vcmask 130048   ;;  %s341_s1 = inlined_call_operand.vmem [shape: bf16[32,16], index: 1, kind: input, shape index: {}]   ;;  %s342_s0 = inlined_call_operand.vmem [shape: f32[8,32], index: 0, kind: input, shape index: {}]   ;;  %s343_s3 = inlined_call_operand.vmem [shape: bf16[16,16], index: 3, kind: input, shape index: {}]   ;;  %s344_s5 = inlined_call_operand.vmem [shape: bf16[16,8], index: 5, kind: input, shape index: {}]   ;;  %s345_s2 = inlined_call_operand.vmem [shape: f32[1,16], index: 2, kind: input, shape index: {}]   ;;  %s346_s4 = inlined_call_operand.vmem [shape: f32[1,16], index: 4, kind: input, shape index: {}]   ;;  %s347_s6 = inlined_call_operand.vmem [shape: f32[1,8], index: 6, kind: input, shape index: {}]   ;;  %s348_s7 = inlined_call_operand.vmem [shape: bf16[8,8], index: 7, kind: output, shape index: {}]  }
   0x1   :  { %241 = vmatprep.subr.bf16.mxu0 %v267_v0  ;;  %v263_v1 = vld [vmem:[%s341_s1 + $0x8] sm:$0xff]   ;;  %245 = vmatprep.mubr.msk.bf16.mxu0 %vm268_vm0, %v267_v0  ;;  %v264_v2 = vld [vmem:[%s341_s1] sm:$0xff]   ;;  %vm218_vm3 = vcmask 60416  }
   0x2   :  { %249 = vmatprep.subr.bf16.mxu1 %v267_v0  ;;  %251 = vmatprep.mubr.msk.bf16.mxu1 %vm268_vm0, %v267_v0  ;;  %v27_v3 = vld [vmem:[%s342_s0] sm:$0xff] }
   0x3   :  { %242 = vmatpush3.bf16.msra.mxu0 %v263_v1  ;;  %v28_v4 = vpack.c.bf16 %v27_v3, %v27_v3  ;;  %v265_v5 = vld [vmem:[%s343_s3] sm:$0xff]  }
   0x4   :  { %243 = vmatprep.subr.bf16.mxu0 %v267_v0  ;;  %250 = vmatpush3.bf16.msra.mxu1 %v265_v5  ;;  %v224_v6 = vld [vmem:[%s345_s2] ss:$0 sm:$0xff] }
   0x5   :  { %255 = vmatprep.subr.bf16.mxu1 %v267_v0  ;;  %v266_v12 = vld [vmem:[%s344_s5] sm:$0xff]  }
   0x6   :  { %v228_v15 = vld [vmem:[%s346_s4] ss:$0 sm:$0xff] }
   0x7   :  { %244 = vmatpush3.bf16.msra.mxu0 %v264_v2  ;;  %v231_v23 = vld [vmem:[%s347_s6] ss:$0 sm:$0xff] }
   0xa   :  { %246 = vmatmul.mubr.msk.bf16.vlgmr.msra.gmra.mxu0 %vm52_vm1, %v28_v4 }
  0xca   :  { %v90_v7 = vpop.f32.mrf.mxu0 }
  0xcb   :  { %v91_v8 = vadd.f32 %v224_v6, %v90_v7 }
  0xcc   :  { %v247_v9 = vpop.f32.mrf.mxu0 }
  0xcd   :  { %v96_v10 = vmax.f32 %v91_v8, 0.0 }
  0xce   :  { %v93_v11 = vpop.f32.mrf.mxu0 }
  0xcf   :  { %v97_v13 = vpack.c.bf16 %v96_v10, %v96_v10 }
  0xd0   :  { %v248_v14 = vpop.f32.mrf.mxu0 }
  0xd1   :  { %252 = vmatmul.mubr.msk.bf16.vlgmr.msra.gmra.mxu1 %vm113_vm2, %v97_v13 }
  0xd2   :  { %256 = vmatpush3.bf16.msra.mxu1 %v266_v12  ;;  %257 = vmatprep.mubr.msk.bf16.mxu1 %vm268_vm0, %v267_v0 }
 0x191   :  { %v151_v16 = vpop.f32.mrf.mxu1 }
 0x192   :  { %v152_v17 = vadd.f32 %v228_v15, %v151_v16 }
 0x193   :  { %v253_v18 = vpop.f32.mrf.mxu1 }
 0x194   :  { %v157_v19 = vmax.f32 %v152_v17, 0.0 }
 0x195   :  { %v154_v20 = vpop.f32.mrf.mxu1 }
 0x196   :  { %v158_v21 = vpack.c.bf16 %v157_v19, %v157_v19 }
 0x197   :  { %v254_v22 = vpop.f32.mrf.mxu1 }
 0x198   :  { %258 = vmatmul.mubr.msk.bf16.vlgmr.msra.gmra.mxu1 %vm113_vm2, %v158_v21 }
 0x258   :  { %v211_v24 = vpop.f32.mrf.mxu1 }
 0x259   :  { %v212_v25 = vadd.f32 %v231_v23, %v211_v24 }
 0x25a   :  { %v259_v26 = vpop.f32.mrf.mxu1 }
 0x25b   :  { %v217_v27 = vpack.c.bf16 %v212_v25, %v212_v25 }
 0x25c   :  { %v214_v28 = vpop.f32.mrf.mxu1 }
 0x25d   :  { %219 = vst.msk [vmem:[%s348_s7] sm:$0xf] %vm218_vm3, %v217_v27 }
 0x25e   :  { %v260_v29 = vpop.f32.mrf.mxu1 }

</bundles_post_ra>
